<compile_context>
chip_gen: v5e
topology: v5e:2x2
jax: 0.10.0
libtpu: 0.0.40
codegen_flags: <defaults>
</compile_context>

<pallas_src>
import jax
import jax.numpy as jnp
from jax.experimental import pallas as pl
from jax.experimental.pallas import tpu as pltpu

_LANE = 128                      # TPU lane width (last dim of the slab)
_SUBLANE = 8                     # f32 sublane count per vreg
_MAX_BLOCK_ROWS = 4096           # 4096 rows x 128 lanes x 4 B = 2 MiB f32 / block
_FAST_PATH_ELEMS = _MAX_BLOCK_ROWS * _LANE   # below ~1 max block: skip Pallas


def _cast_kernel(idx_ref, out_ref):
    # float32 -> int32 truncation toward zero (same as torch .long() for the
    # non-negative integral index values stored in this parameter).  One VPU
    # convert per vreg; the kernel is HBM-bound, nothing else to do here.
    out_ref[...] = idx_ref[...].astype(jnp.int32)


def _build_slab(flat: jax.Array) -> jax.Array:
    """Pad once (at init/reorder time) to a lane-dense (rows, 128) f32 slab."""
    n = flat.shape[0]
    rows = pl.cdiv(n, _LANE)
    pad = rows * _LANE - n
    if pad:
        flat = jnp.pad(flat, (0, pad))           # one-time copy, not per forward
    return flat.reshape(rows, _LANE)


def _choose_block_rows(rows_out: int) -> int:
    """Block size: cap at ~2 MiB, but keep >=~8 grid steps (v7x megacore +
    pipelining), rounded to the f32 sublane multiple."""
    target = pl.cdiv(rows_out, 8)
    target = max(_SUBLANE, ((target + _SUBLANE - 1) // _SUBLANE) * _SUBLANE)
    return min(_MAX_BLOCK_ROWS, target)


def sparse_index_forward(indices_flat: jax.Array,
                         indices_slab: jax.Array,
                         size_sparsified: int) -> jax.Array:
    """Pallas implementation of SparseIndex.forward().

    Args:
      indices_flat: float32 (size,) parameter (canonical storage).
      indices_slab: float32 (ceil(size/128), 128) pre-padded view of the same
        values (built once in __init__/reorder, NOT per forward).
      size_sparsified: number of leading elements to keep (k).

    Returns:
      int32 vector of shape (size_sparsified,).
    """
    k = int(size_sparsified)

    # Fast path: below ~1 block the kernel is pure launch/DMA-setup overhead;
    # XLA's fused slice+convert is strictly cheaper.
    if k < _FAST_PATH_ELEMS:
        return indices_flat[:k].astype(jnp.int32)

    # ---- Pallas path: process only the first k elements of the slab --------
    rows_out = pl.cdiv(k, _LANE)                 # rows needed for the output
    block_rows = _choose_block_rows(rows_out)
    grid = (pl.cdiv(rows_out, block_rows),)

    out = pl.pallas_call(
        _cast_kernel,
        out_shape=jax.ShapeDtypeStruct((rows_out, _LANE), jnp.int32),
        grid=grid,
        # Same block index map for in/out; the grid only covers the leading
        # rows of the (larger) input slab, so no input pre-slice is needed.
        # Ragged last blocks are handled by Pallas (input pad / output mask).
        in_specs=[pl.BlockSpec((block_rows, _LANE), lambda i: (i, 0))],
        out_specs=pl.BlockSpec((block_rows, _LANE), lambda i: (i, 0)),
        compiler_params=pltpu.CompilerParams(
            dimension_semantics=("parallel",)),
    )(indices_slab)

    flat = out.reshape(rows_out * _LANE)
    if rows_out * _LANE == k:
        return flat                               # no trailing-slice copy at all
    return flat[:k]                               # copies only a k-sized buffer


class SparseIndexJAX:
    """Deterministic JAX re-implementation of the SparseIndex module."""

    def __init__(self, size: int):
        if size > (1 << 24):
            # float32 storage cannot represent indices >= 2^24 exactly; the
            # PyTorch module silently corrupts them, we refuse instead.
            raise ValueError("SparseIndex: size > 2^24 not exactly representable in f32")
        self.size_origin = size
        self.size_sparsified = size
        # Parameter init exactly as in __init__: arange(size).float()
        self.indices = jnp.arange(size, dtype=jnp.float32)
        # Pre-padded lane-dense slab, rebuilt only here and in reorder().
        self._slab = _build_slab(self.indices)

    def __call__(self) -> jax.Array:
        return sparse_index_forward(self.indices, self._slab, self.size_sparsified)

    def reorder(self, new_indices):
        # Mirrors reorder(): copy a permutation into the parameter buffer.
        self.indices = jnp.asarray(new_indices, dtype=jnp.float32)
        self._slab = _build_slab(self.indices)

    def sparsify(self, num_elements: int):
        self.size_sparsified = self.size_origin - num_elements

    # TODO(synk): densify() only mutates parameter storage (re-allocates the
    # truncated parameter); it has no forward-pass compute to port to Pallas.


if __name__ == "__main__":
    key = jax.random.PRNGKey(0)

    # --- Test 1: dense forward, small size (fast path) ----------------------
    size = 32
    module = SparseIndexJAX(size)
    out_dense = jax.block_until_ready(module())
    expected_dense = jnp.arange(size, dtype=jnp.int32)
    assert out_dense.shape == (size,)
    assert out_dense.dtype == jnp.int32
    assert bool(jnp.all(out_dense == expected_dense))

    # --- Test 2: reorder() + sparsify(8) -> keep first 24 entries -----------
    perm = jax.random.permutation(key, size).astype(jnp.float32)
    module.reorder(perm)
    module.sparsify(8)  # size_sparsified = 24
    out_sparse = jax.block_until_ready(module())
    expected_sparse = perm[:24].astype(jnp.int32)
    assert out_sparse.shape == (24,)
    assert bool(jnp.all(out_sparse == expected_sparse))

    # --- Test 3: large size exercising the tiled Pallas path ----------------
    # 1,050,000 elements, sparsified to 1,000,000: above the fast-path
    # threshold, multi-block grid, ragged tail on both input and output,
    # non-lane-aligned k (exercises the k-sized post slice).
    big = 1_050_000
    big_mod = SparseIndexJAX(big)
    big_mod.sparsify(50_000)  # keep first 1,000,000
    out_big = jax.block_until_ready(big_mod())
    expected_big = jnp.arange(big - 50_000, dtype=jnp.int32)
    assert out_big.shape == (big - 50_000,)
    assert out_big.dtype == jnp.int32
    assert bool(jnp.all(out_big == expected_big))

    print("KERNEL_OK")
</pallas_src>

<mosaic_0001>
module attributes {stable_mosaic.version = 11 : i64} {
  func.func @_cast_kernel(%arg0: i32, %arg1: memref<984x128xf32, #tpu.memory_space<vmem>>, %arg2: memref<984x128xi32, #tpu.memory_space<vmem>>) attributes {dimension_semantics = [#tpu.dimension_semantics<parallel>], iteration_bounds = array<i64: 8>, scalar_prefetch = 0 : i64, scratch_operands = 0 : i64, tpu.core_type = #tpu.core_type<tc>, window_params = [{transform_indices = @transform_0, window_bounds = array<i64: 984, 128>}, {transform_indices = @transform_1, window_bounds = array<i64: 984, 128>}]} {
    %c0 = arith.constant 0 : index
    %c0_0 = arith.constant 0 : index
    %0 = vector.load %arg1[%c0, %c0_0] : memref<984x128xf32, #tpu.memory_space<vmem>>, vector<984x128xf32>
    %1 = arith.fptosi %0 : vector<984x128xf32> to vector<984x128xi32>
    %c0_1 = arith.constant 0 : index
    %c0_2 = arith.constant 0 : index
    %2 = vector.load %arg2[%c0_1, %c0_2] : memref<984x128xi32, #tpu.memory_space<vmem>>, vector<984x128xi32>
    tpu.vector_store %arg2[%c0_1, %c0_2], %1 {strides = array<i32>} : memref<984x128xi32, #tpu.memory_space<vmem>>, vector<984x128xi32>,
    return
  }
  func.func @transform_0(%arg0: i32) -> (i32, i32) {
    %c0_i32 = arith.constant 0 : i32
    %c0_i32_0 = arith.constant 0 : i32
    return %arg0, %c0_i32 : i32, i32
  }
  func.func @transform_1(%arg0: i32) -> (i32, i32) {
    %c0_i32 = arith.constant 0 : i32
    %c0_i32_0 = arith.constant 0 : i32
    return %arg0, %c0_i32 : i32, i32
  }
}

</mosaic_0001>

<bundles_post_ra>
// kernel: tpu_custom_call.1
= control target key start
LH: loop header
LB: loop body
LE: loop exit
PB: predicated region body
PF: predicated region fallthrough
CT: control target
= control target key end

     0   :  { %6 = vsyncpa [#allocation3], 0  ;;  %s1858_s0 = inlined_call_operand.hbm [shape: f32[8204,128], index: 0, kind: input, shape index: {}]   ;;  %s1859_s1 = inlined_call_operand.hbm [shape: s32[7813,128], index: 1, kind: output, shape index: {}]  }
   0x1   :  { %8 = vsyncpa [#allocation3 + $0x1], 0 }
   0x2   :  { %9 = vsyncpa [#allocation4], 0 }
   0x3   :  { %11 = vsyncpa [#allocation4 + $0x1], 0  ;;  %s1431_s6 = smov 0   ;;  %s1433_s7 = smov 0  }
   0x4   :  { %s1435_s8 = smov 0   ;;  %s1437_s9 = smov 0  }
   0x5 LB: > { %s1452_s10 = sadd.s32 4294967295, %s1413_s9   ;;  %s619_s11 = sadd.s32 4294967294, %s1413_s9   ;;  %s1413_s9 = sphi %s1437_s9, %s1868_s9   ;;  %s1409_s8 = sphi %s1435_s8, %s1867_s8   ;;  %s1405_s7 = sphi %s1433_s7, %s1866_s7   ;;  %s1401_s6 = sphi %s1431_s6, %s1865_s6  }
   0x6   : > { %s1456_s12 = sadd.s32 1, %s1413_s9   ;;  %s24_s13 = sadd.s32 1, %s1409_s8 }
   0x7   : > { %s21_s14 = ssub.s32 %s1413_s9, %s1456_s12  ;;  %p31_p0 = scmp.ne.s32.totalorder %s1409_s8, %s1405_s7 }
   0x8   : > { %p22_p1 = scmp.eq.s32.totalorder %s21_s14, 0  ;;  %p32_p2 = scmp.eq.s32.totalorder %s1413_s9, 0 }
   0x9   : > { %p37_p3 = scmp.ne.s32.totalorder %s1405_s7, %s1401_s6  ;;  %p38_p4 = scmp.eq.s32.totalorder %s1452_s10, 0 }
   0xa   : > { %s1468_s15 = scalar_select %p22_p1, %s1409_s8, %s24_s13  }
   0xb   : > { %p33_p5 = por %p32_p2, %p31_p0  ;;  %p1470_p6 = por %p38_p4, %p37_p3 }
   0xc   : > { %p61_p7 = scmp.eq.s32.totalorder %s1452_s10, 7  ;;  %p67_p8 = scmp.eq.s32.totalorder %s619_s11, 7 }
   0xd   : > { %p621_p11 = scmp.ge.s32.totalorder %s1413_s9, 8 }
   0xe   : > { %p1475_p9 = por %p61_p7, %p31_p0  ;;  %p1479_p10 = por %p67_p8, %p37_p3 }
   0xf   : > { %83 = sbr.rel (%p621_p11) target bundleno = 58 (0x3a), region = 16 }
  0x14   : > { %86 = sbr.rel (!%p33_p5) target bundleno = 58 (0x3a), region = 20  ;;  %s87_s19 = sand.u32 (%p33_p5), 1, %s1409_s8  }
  0x15   : > { %s92_s20 = smul.u32 (%p33_p5), 123, %s1413_s9  ;;  %s1489_s26 = scalar_lea.sflag (%p33_p5), [#allocation3], %s87_s19 }
  0x16   : > { %s637_s21 = smul.u32 (%p33_p5), 984, %s87_s19 }
  0x17   : > { %s93_s22 = ssub.s32 (%p33_p5), 1026, %s92_s20 }
  0x18   : > { %p94_p12 = scmp.lt.s32.totalorder (%p33_p5), %s93_s22, 123  ;;  %s91_s27 = scalar_lea.vmem (%p33_p5), [#allocation2], %s637_s21 }
  0x1a   : > { %s1870_s22 = smov (!%p94_p12, %s93_s22), 123 }
  0x1b   : > { %s622_s23 = sshll.u32 %s1870_s22, 3 }
  0x1c   : > { %s97_s24 = ssub.s32 984, %s622_s23 }
  0x1d   : > { %s98_s25 = sshll.u32 %s97_s24, 4 }
  0x1e   : > { %99 = vsyncadd %s1489_s26, %s98_s25  ;;  %p1492_p13 = scmp.ne.s32.totalorder %s622_s23, 0  ;;  %s635_s29 = smul.u32 984, %s1413_s9 }
  0x1f   : > { %s1497_s30 = sshll.u32 %s91_s27, 4  ;;  %s626_s2 = sshll.u32 %s1870_s22, 7  ;;  %s107_s30 = int_to_ptr.vmem [resolvable:$true] %s1497_s30 }
  0x20   : > { %s102_s5 = scalar_lea.hbm %s1858_s0, %s635_s29  ;;  %s1299_s14 = sshrl.u32 %s626_s2, 4 }
  0x21   : > { %s104_s11 = sshll.u32 %s102_s5, 4  ;;  %s1308_s23 = scalar_lea.hbm %s1858_s0, 8208  ;;  %s1504_s11 = int_to_ptr.hbm [resolvable:$true] %s104_s11 }
  0x22   : > { %s1297_s13 = sshra.s32 %s1504_s11, 4  ;;  %s1298_s13 = int_to_ptr.hbm [resolvable:$true] %s1297_s13 }
  0x23   : > { %s1304_s19 = scalar_lea.hbm %s1298_s13, %s1299_s14  ;;  %p1309_p3 = scmp.lt.s32.totalorder %s1298_s13, %s1858_s0 }
  0x24   : > { %p1305_p0 = scmp.ne.s32.totalorder %s1298_s13, %s1304_s19  ;;  %p1310_p4 = scmp.lt.s32.totalorder %s1308_s23, %s1304_s19 }
  0x26   : > { %p1306_p1 = pnand %p1305_p0, %p1492_p13  ;;  %p1311_p5 = por %p1310_p4, %p1309_p3 }
  0x28   : > { %p1307_p2 = pneg %p1306_p1 }
  0x2a   : > { %p1312_p7 = pnand %p1311_p5, %p1307_p2 }
  0x2c   : > { %1315 = shalt.err (!%p1312_p7)
}
  0x2d   : > { %s1316_s27 = sshra.s32 %s107_s30, 4  ;;  %s1415_s3 = smov [#allocation2]   ;;  %s1317_s27 = int_to_ptr.vmem [resolvable:$true] %s1316_s27 }
  0x2e   : > { %s1323_s29 = scalar_lea.vmem %s1317_s27, %s1299_s14  ;;  %s1327_s4 = scalar_lea.vmem %s1415_s3, 1968 }
  0x2f   : > { %p1324_p8 = scmp.ne.s32.totalorder %s1317_s27, %s1323_s29  ;;  %p1329_p0 = scmp.lt.s32.totalorder %s1327_s4, %s1323_s29 }
  0x31   : > { %p1325_p11 = pnand %p1324_p8, %p1492_p13 }
  0x33   : > { %p1326_p12 = pneg %p1325_p11 }
  0x35   : > { %p1331_p1 = pnand %p1329_p0, %p1326_p12 }
  0x37   : > { %1334 = shalt.err (!%p1331_p1)
}
  0x38   : > { %s1416_s5 = smov 128   ;;  %s1417_s13 = smov 8  }
  0x39   : > { %112 = dma.hbm_to_vmem [thread:$0]  (%p1492_p13), %s1504_s11, %s626_s2, %s107_s30, %s1489_s26, %s1416_s5, %s1416_s5, %s1417_s13  }
  0x3a PF: > { %p627_p2 = scmp.ge.s32.totalorder %s1413_s9, 1  ;;  %p114_p3 = scmp.lt.s32.totalorder %s1413_s9, 9 }
  0x3c   : > { %p115_p4 = pnand %p627_p2, %p114_p3 }
  0x3d   : > { %s1532_s14 = sand.u32 (!%p115_p4), 1, %s1405_s7  }
  0x3e   : > { %118 = sbr.rel (%p115_p4) target bundleno = 258 (0x102), region = 24  ;;  %s121_s28 = scalar_lea.sflag (!%p115_p4), [#allocation3], %s1532_s14 }
  0x3f   : > { %s638_s19 = smul.u32 (!%p115_p4), 984, %s1532_s14 }
  0x41   : > { %s1538_s22 = scalar_lea.vmem (!%p115_p4), [#allocation2], %s638_s19 }
  0x43   : > { %1392 = dma.done.wait (%p1470_p6), %s121_s28, 15744  }
  0x44   : > { %1394 = vsyncadd (%p1470_p6), %s121_s28, 4294951552  ;;  %v154_v0 = vld [vmem:[%s1538_s22] sm:$0xff]  ;;  %v155_v1 = vld [vmem:[%s1538_s22 + $0x8] sm:$0xff]  ;;  %s1554_s16 = scalar_lea.vmem [#allocation5], %s638_s19  ;;  %s524_s26 = scalar_lea.sflag [#allocation4], %s1532_s14 }
  0x45   : > { %v156_v2 = vld [vmem:[%s1538_s22 + $0x10] sm:$0xff]  ;;  %vm639_vm0 = vcmp.lt.s32.totalorder %v154_v0, 0  ;;  %v640_v3 = vceil.f32 %v154_v0  ;;  %v641_v4 = vfloor.f32 %v154_v0  ;;  %vm644_vm1 = vcmp.lt.s32.totalorder %v155_v1, 0  ;;  %v157_v5 = vld [vmem:[%s1538_s22 + $0x18] sm:$0xff]  ;;  %v158_v6 = vld [vmem:[%s1538_s22 + $0x20] sm:$0xff]  ;;  %s531_s30 = smul.u32 (%p1475_p9), 123, %s1452_s10 }
  0x46   : > { %v645_v7 = vceil.f32 %v155_v1  ;;  %v646_v8 = vfloor.f32 %v155_v1  ;;  %vm649_vm2 = vcmp.lt.s32.totalorder %v156_v2, 0  ;;  %v650_v9 = vceil.f32 %v156_v2  ;;  %v159_v13 = vld [vmem:[%s1538_s22 + $0x28] sm:$0xff]  ;;  %v160_v17 = vld [vmem:[%s1538_s22 + $0x30] sm:$0xff]  ;;  %v161_v22 = vld [vmem:[%s1538_s22 + $0x38] sm:$0xff] }
  0x47   : > { %v642_v10 = vsel %vm639_vm0, %v640_v3, %v641_v4  ;;  %v651_v11 = vfloor.f32 %v156_v2  ;;  %vm654_vm3 = vcmp.lt.s32.totalorder %v157_v5, 0  ;;  %v655_v12 = vceil.f32 %v157_v5  ;;  %v162_v26 = vld [vmem:[%s1538_s22 + $0x40] sm:$0xff]  ;;  %v163_v33 = vld [vmem:[%s1538_s22 + $0x48] sm:$0xff]  ;;  %v164_v37 = vld [vmem:[%s1538_s22 + $0x50] sm:$0xff]  ;;  %s532_s2 = ssub.s32 (%p1475_p9), 977, %s531_s30 }
  0x48   : > { %v643_v14 = vcvt.f32.s32 %v642_v10  ;;  %v647_v15 = vsel %vm644_vm1, %v645_v7, %v646_v8  ;;  %v656_v16 = vfloor.f32 %v157_v5  ;;  %vm659_vm4 = vcmp.lt.s32.totalorder %v158_v6, 0  ;;  %v165_v42 = vld [vmem:[%s1538_s22 + $0x58] sm:$0xff]  ;;  %v166_v46 = vld [vmem:[%s1538_s22 + $0x60] sm:$0xff]  ;;  %v167_v53 = vld [vmem:[%s1538_s22 + $0x68] sm:$0xff]  ;;  %p533_p6 = scmp.lt.s32.totalorder (%p1475_p9), %s532_s2, 123 }
  0x49   : > { %v648_v18 = vcvt.f32.s32 %v647_v15  ;;  %v652_v19 = vsel %vm649_vm2, %v650_v9, %v651_v11  ;;  %v660_v20 = vceil.f32 %v158_v6  ;;  %v661_v21 = vfloor.f32 %v158_v6  ;;  %v168_v57 = vld [vmem:[%s1538_s22 + $0x70] sm:$0xff]  ;;  %v169_v62 = vld [vmem:[%s1538_s22 + $0x78] sm:$0xff]  ;;  %v170_v2 = vld [vmem:[%s1538_s22 + $0x80] sm:$0xff] }
  0x4a   : > { %400 = vst [vmem:[%s1554_s16] sm:$0xff] %v643_v14  ;;  %v653_v23 = vcvt.f32.s32 %v652_v19  ;;  %v657_v24 = vsel %vm654_vm3, %v655_v12, %v656_v16  ;;  %vm664_vm5 = vcmp.lt.s32.totalorder %v159_v13, 0  ;;  %v665_v25 = vceil.f32 %v159_v13  ;;  %v171_v9 = vld [vmem:[%s1538_s22 + $0x88] sm:$0xff] }
  0x4b   : > { %401 = vst [vmem:[%s1554_s16 + $0x8] sm:$0xff] %v648_v18  ;;  %v658_v27 = vcvt.f32.s32 %v657_v24  ;;  %v662_v28 = vsel %vm659_vm4, %v660_v20, %v661_v21  ;;  %v666_v29 = vfloor.f32 %v159_v13  ;;  %vm669_vm6 = vcmp.lt.s32.totalorder %v160_v17, 0  ;;  %v172_v13 = vld [vmem:[%s1538_s22 + $0x90] sm:$0xff]  ;;  %v173_v18 = vld [vmem:[%s1538_s22 + $0x98] sm:$0xff] }
  0x4c   : > { %402 = vst [vmem:[%s1554_s16 + $0x10] sm:$0xff] %v653_v23  ;;  %v663_v30 = vcvt.f32.s32 %v662_v28  ;;  %v670_v31 = vceil.f32 %v160_v17  ;;  %v671_v32 = vfloor.f32 %v160_v17  ;;  %vm674_vm7 = vcmp.lt.s32.totalorder %v161_v22, 0 }
  0x4d   : > { %403 = vst [vmem:[%s1554_s16 + $0x18] sm:$0xff] %v658_v27  ;;  %v667_v34 = vsel %vm664_vm5, %v665_v25, %v666_v29  ;;  %v675_v35 = vceil.f32 %v161_v22  ;;  %v676_v36 = vfloor.f32 %v161_v22  ;;  %vm679_vm8 = vcmp.lt.s32.totalorder %v162_v26, 0  ;;  %v174_v22 = vld [vmem:[%s1538_s22 + $0xa0] sm:$0xff]  ;;  %v175_v29 = vld [vmem:[%s1538_s22 + $0xa8] sm:$0xff] }
  0x4e   : > { %404 = vst [vmem:[%s1554_s16 + $0x20] sm:$0xff] %v663_v30  ;;  %v668_v38 = vcvt.f32.s32 %v667_v34  ;;  %v672_v39 = vsel %vm669_vm6, %v670_v31, %v671_v32  ;;  %v680_v40 = vceil.f32 %v162_v26  ;;  %v681_v41 = vfloor.f32 %v162_v26 }
  0x4f   : > { %v673_v43 = vcvt.f32.s32 %v672_v39  ;;  %v677_v44 = vsel %vm674_vm7, %v675_v35, %v676_v36  ;;  %vm684_vm9 = vcmp.lt.s32.totalorder %v163_v33, 0  ;;  %v685_v45 = vceil.f32 %v163_v33 }
  0x50   : > { %405 = vst [vmem:[%s1554_s16 + $0x28] sm:$0xff] %v668_v38  ;;  %v678_v47 = vcvt.f32.s32 %v677_v44  ;;  %v682_v48 = vsel %vm679_vm8, %v680_v40, %v681_v41  ;;  %v686_v49 = vfloor.f32 %v163_v33  ;;  %vm689_vm10 = vcmp.lt.s32.totalorder %v164_v37, 0  ;;  %v176_v33 = vld [vmem:[%s1538_s22 + $0xb0] sm:$0xff]  ;;  %v177_v38 = vld [vmem:[%s1538_s22 + $0xb8] sm:$0xff] }
  0x51   : > { %406 = vst [vmem:[%s1554_s16 + $0x30] sm:$0xff] %v673_v43  ;;  %v683_v50 = vcvt.f32.s32 %v682_v48  ;;  %v690_v51 = vceil.f32 %v164_v37  ;;  %v691_v52 = vfloor.f32 %v164_v37  ;;  %vm694_vm11 = vcmp.lt.s32.totalorder %v165_v42, 0 }
  0x52   : > { %407 = vst [vmem:[%s1554_s16 + $0x38] sm:$0xff] %v678_v47  ;;  %v687_v54 = vsel %vm684_vm9, %v685_v45, %v686_v49  ;;  %v695_v55 = vceil.f32 %v165_v42  ;;  %v696_v56 = vfloor.f32 %v165_v42  ;;  %vm699_vm12 = vcmp.lt.s32.totalorder %v166_v46, 0  ;;  %v178_v42 = vld [vmem:[%s1538_s22 + $0xc0] sm:$0xff]  ;;  %v179_v49 = vld [vmem:[%s1538_s22 + $0xc8] sm:$0xff] }
  0x53   : > { %408 = vst [vmem:[%s1554_s16 + $0x40] sm:$0xff] %v683_v50  ;;  %v688_v58 = vcvt.f32.s32 %v687_v54  ;;  %v692_v59 = vsel %vm689_vm10, %v690_v51, %v691_v52  ;;  %v700_v60 = vceil.f32 %v166_v46  ;;  %v701_v61 = vfloor.f32 %v166_v46 }
  0x54   : > { %v693_v63 = vcvt.f32.s32 %v692_v59  ;;  %v697_v0 = vsel %vm694_vm11, %v695_v55, %v696_v56  ;;  %vm704_vm13 = vcmp.lt.s32.totalorder %v167_v53, 0  ;;  %v705_v1 = vceil.f32 %v167_v53 }
  0x55   : > { %409 = vst [vmem:[%s1554_s16 + $0x48] sm:$0xff] %v688_v58  ;;  %v698_v3 = vcvt.f32.s32 %v697_v0  ;;  %v702_v4 = vsel %vm699_vm12, %v700_v60, %v701_v61  ;;  %v706_v5 = vfloor.f32 %v167_v53  ;;  %vm709_vm14 = vcmp.lt.s32.totalorder %v168_v57, 0  ;;  %v180_v53 = vld [vmem:[%s1538_s22 + $0xd0] sm:$0xff]  ;;  %v181_v58 = vld [vmem:[%s1538_s22 + $0xd8] sm:$0xff] }
  0x56   : > { %410 = vst [vmem:[%s1554_s16 + $0x50] sm:$0xff] %v693_v63  ;;  %v703_v6 = vcvt.f32.s32 %v702_v4  ;;  %v710_v7 = vceil.f32 %v168_v57  ;;  %v711_v8 = vfloor.f32 %v168_v57  ;;  %vm714_vm15 = vcmp.lt.s32.totalorder %v169_v62, 0 }
  0x57   : > { %411 = vst [vmem:[%s1554_s16 + $0x58] sm:$0xff] %v698_v3  ;;  %v707_v10 = vsel %vm704_vm13, %v705_v1, %v706_v5  ;;  %v715_v11 = vceil.f32 %v169_v62  ;;  %v716_v12 = vfloor.f32 %v169_v62  ;;  %vm719_vm0 = vcmp.lt.s32.totalorder %v170_v2, 0  ;;  %v182_v62 = vld [vmem:[%s1538_s22 + $0xe0] sm:$0xff]  ;;  %v183_v5 = vld [vmem:[%s1538_s22 + $0xe8] sm:$0xff] }
  0x58   : > { %412 = vst [vmem:[%s1554_s16 + $0x60] sm:$0xff] %v703_v6  ;;  %v708_v14 = vcvt.f32.s32 %v707_v10  ;;  %v712_v15 = vsel %vm709_vm14, %v710_v7, %v711_v8  ;;  %v720_v16 = vceil.f32 %v170_v2  ;;  %v721_v17 = vfloor.f32 %v170_v2 }
  0x59   : > { %v713_v19 = vcvt.f32.s32 %v712_v15  ;;  %v717_v20 = vsel %vm714_vm15, %v715_v11, %v716_v12  ;;  %vm724_vm1 = vcmp.lt.s32.totalorder %v171_v9, 0  ;;  %v725_v21 = vceil.f32 %v171_v9 }
  0x5a   : > { %413 = vst [vmem:[%s1554_s16 + $0x68] sm:$0xff] %v708_v14  ;;  %v718_v23 = vcvt.f32.s32 %v717_v20  ;;  %v722_v24 = vsel %vm719_vm0, %v720_v16, %v721_v17  ;;  %v726_v25 = vfloor.f32 %v171_v9  ;;  %vm729_vm2 = vcmp.lt.s32.totalorder %v172_v13, 0  ;;  %v184_v9 = vld [vmem:[%s1538_s22 + $0xf0] sm:$0xff]  ;;  %v185_v14 = vld [vmem:[%s1538_s22 + $0xf8] sm:$0xff] }
  0x5b   : > { %414 = vst [vmem:[%s1554_s16 + $0x70] sm:$0xff] %v713_v19  ;;  %v723_v26 = vcvt.f32.s32 %v722_v24  ;;  %v730_v27 = vceil.f32 %v172_v13  ;;  %v731_v28 = vfloor.f32 %v172_v13  ;;  %vm734_vm3 = vcmp.lt.s32.totalorder %v173_v18, 0 }
  0x5c   : > { %415 = vst [vmem:[%s1554_s16 + $0x78] sm:$0xff] %v718_v23  ;;  %v727_v30 = vsel %vm724_vm1, %v725_v21, %v726_v25  ;;  %v735_v31 = vceil.f32 %v173_v18  ;;  %v736_v32 = vfloor.f32 %v173_v18  ;;  %vm739_vm4 = vcmp.lt.s32.totalorder %v174_v22, 0  ;;  %v186_v18 = vld [vmem:[%s1538_s22 + $0x100] sm:$0xff]  ;;  %v187_v25 = vld [vmem:[%s1538_s22 + $0x108] sm:$0xff] }
  0x5d   : > { %416 = vst [vmem:[%s1554_s16 + $0x80] sm:$0xff] %v723_v26  ;;  %v728_v34 = vcvt.f32.s32 %v727_v30  ;;  %v732_v35 = vsel %vm729_vm2, %v730_v27, %v731_v28  ;;  %v740_v36 = vceil.f32 %v174_v22  ;;  %v741_v37 = vfloor.f32 %v174_v22 }
  0x5e   : > { %v733_v39 = vcvt.f32.s32 %v732_v35  ;;  %v737_v40 = vsel %vm734_vm3, %v735_v31, %v736_v32  ;;  %vm744_vm5 = vcmp.lt.s32.totalorder %v175_v29, 0  ;;  %v745_v41 = vceil.f32 %v175_v29 }
  0x5f   : > { %417 = vst [vmem:[%s1554_s16 + $0x88] sm:$0xff] %v728_v34  ;;  %v738_v43 = vcvt.f32.s32 %v737_v40  ;;  %v742_v44 = vsel %vm739_vm4, %v740_v36, %v741_v37  ;;  %v746_v45 = vfloor.f32 %v175_v29  ;;  %vm749_vm6 = vcmp.lt.s32.totalorder %v176_v33, 0  ;;  %v188_v29 = vld [vmem:[%s1538_s22 + $0x110] sm:$0xff]  ;;  %v189_v34 = vld [vmem:[%s1538_s22 + $0x118] sm:$0xff] }
  0x60   : > { %418 = vst [vmem:[%s1554_s16 + $0x90] sm:$0xff] %v733_v39  ;;  %v743_v46 = vcvt.f32.s32 %v742_v44  ;;  %v750_v47 = vceil.f32 %v176_v33  ;;  %v751_v48 = vfloor.f32 %v176_v33  ;;  %vm754_vm7 = vcmp.lt.s32.totalorder %v177_v38, 0 }
  0x61   : > { %419 = vst [vmem:[%s1554_s16 + $0x98] sm:$0xff] %v738_v43  ;;  %v747_v50 = vsel %vm744_vm5, %v745_v41, %v746_v45  ;;  %v755_v51 = vceil.f32 %v177_v38  ;;  %v756_v52 = vfloor.f32 %v177_v38  ;;  %vm759_vm8 = vcmp.lt.s32.totalorder %v178_v42, 0  ;;  %v190_v38 = vld [vmem:[%s1538_s22 + $0x120] sm:$0xff]  ;;  %v191_v45 = vld [vmem:[%s1538_s22 + $0x128] sm:$0xff] }
  0x62   : > { %420 = vst [vmem:[%s1554_s16 + $0xa0] sm:$0xff] %v743_v46  ;;  %v748_v54 = vcvt.f32.s32 %v747_v50  ;;  %v752_v55 = vsel %vm749_vm6, %v750_v47, %v751_v48  ;;  %v760_v56 = vceil.f32 %v178_v42  ;;  %v761_v57 = vfloor.f32 %v178_v42 }
  0x63   : > { %v753_v59 = vcvt.f32.s32 %v752_v55  ;;  %v757_v60 = vsel %vm754_vm7, %v755_v51, %v756_v52  ;;  %vm764_vm9 = vcmp.lt.s32.totalorder %v179_v49, 0  ;;  %v765_v61 = vceil.f32 %v179_v49 }
  0x64   : > { %421 = vst [vmem:[%s1554_s16 + $0xa8] sm:$0xff] %v748_v54  ;;  %v758_v63 = vcvt.f32.s32 %v757_v60  ;;  %v762_v0 = vsel %vm759_vm8, %v760_v56, %v761_v57  ;;  %v766_v1 = vfloor.f32 %v179_v49  ;;  %vm769_vm10 = vcmp.lt.s32.totalorder %v180_v53, 0  ;;  %v192_v49 = vld [vmem:[%s1538_s22 + $0x130] sm:$0xff]  ;;  %v193_v54 = vld [vmem:[%s1538_s22 + $0x138] sm:$0xff] }
  0x65   : > { %422 = vst [vmem:[%s1554_s16 + $0xb0] sm:$0xff] %v753_v59  ;;  %v763_v2 = vcvt.f32.s32 %v762_v0  ;;  %v770_v3 = vceil.f32 %v180_v53  ;;  %v771_v4 = vfloor.f32 %v180_v53  ;;  %vm774_vm11 = vcmp.lt.s32.totalorder %v181_v58, 0 }
  0x66   : > { %423 = vst [vmem:[%s1554_s16 + $0xb8] sm:$0xff] %v758_v63  ;;  %v767_v6 = vsel %vm764_vm9, %v765_v61, %v766_v1  ;;  %v775_v7 = vceil.f32 %v181_v58  ;;  %v776_v8 = vfloor.f32 %v181_v58  ;;  %vm779_vm12 = vcmp.lt.s32.totalorder %v182_v62, 0  ;;  %v194_v58 = vld [vmem:[%s1538_s22 + $0x140] sm:$0xff]  ;;  %v195_v1 = vld [vmem:[%s1538_s22 + $0x148] sm:$0xff] }
  0x67   : > { %424 = vst [vmem:[%s1554_s16 + $0xc0] sm:$0xff] %v763_v2  ;;  %v768_v10 = vcvt.f32.s32 %v767_v6  ;;  %v772_v11 = vsel %vm769_vm10, %v770_v3, %v771_v4  ;;  %v780_v12 = vceil.f32 %v182_v62  ;;  %v781_v13 = vfloor.f32 %v182_v62 }
  0x68   : > { %v773_v15 = vcvt.f32.s32 %v772_v11  ;;  %v777_v16 = vsel %vm774_vm11, %v775_v7, %v776_v8  ;;  %vm784_vm13 = vcmp.lt.s32.totalorder %v183_v5, 0  ;;  %v785_v17 = vceil.f32 %v183_v5 }
  0x69   : > { %425 = vst [vmem:[%s1554_s16 + $0xc8] sm:$0xff] %v768_v10  ;;  %v778_v19 = vcvt.f32.s32 %v777_v16  ;;  %v782_v20 = vsel %vm779_vm12, %v780_v12, %v781_v13  ;;  %v786_v21 = vfloor.f32 %v183_v5  ;;  %vm789_vm14 = vcmp.lt.s32.totalorder %v184_v9, 0  ;;  %v196_v5 = vld [vmem:[%s1538_s22 + $0x150] sm:$0xff]  ;;  %v197_v10 = vld [vmem:[%s1538_s22 + $0x158] sm:$0xff] }
  0x6a   : > { %426 = vst [vmem:[%s1554_s16 + $0xd0] sm:$0xff] %v773_v15  ;;  %v783_v22 = vcvt.f32.s32 %v782_v20  ;;  %v790_v23 = vceil.f32 %v184_v9  ;;  %v791_v24 = vfloor.f32 %v184_v9  ;;  %vm794_vm15 = vcmp.lt.s32.totalorder %v185_v14, 0 }
  0x6b   : > { %427 = vst [vmem:[%s1554_s16 + $0xd8] sm:$0xff] %v778_v19  ;;  %v787_v26 = vsel %vm784_vm13, %v785_v17, %v786_v21  ;;  %v795_v27 = vceil.f32 %v185_v14  ;;  %v796_v28 = vfloor.f32 %v185_v14  ;;  %vm799_vm0 = vcmp.lt.s32.totalorder %v186_v18, 0  ;;  %v198_v14 = vld [vmem:[%s1538_s22 + $0x160] sm:$0xff]  ;;  %v199_v21 = vld [vmem:[%s1538_s22 + $0x168] sm:$0xff] }
  0x6c   : > { %428 = vst [vmem:[%s1554_s16 + $0xe0] sm:$0xff] %v783_v22  ;;  %v788_v30 = vcvt.f32.s32 %v787_v26  ;;  %v792_v31 = vsel %vm789_vm14, %v790_v23, %v791_v24  ;;  %v800_v32 = vceil.f32 %v186_v18  ;;  %v801_v33 = vfloor.f32 %v186_v18 }
  0x6d   : > { %v793_v35 = vcvt.f32.s32 %v792_v31  ;;  %v797_v36 = vsel %vm794_vm15, %v795_v27, %v796_v28  ;;  %vm804_vm1 = vcmp.lt.s32.totalorder %v187_v25, 0  ;;  %v805_v37 = vceil.f32 %v187_v25 }
  0x6e   : > { %429 = vst [vmem:[%s1554_s16 + $0xe8] sm:$0xff] %v788_v30  ;;  %v798_v39 = vcvt.f32.s32 %v797_v36  ;;  %v802_v40 = vsel %vm799_vm0, %v800_v32, %v801_v33  ;;  %v806_v41 = vfloor.f32 %v187_v25  ;;  %vm809_vm2 = vcmp.lt.s32.totalorder %v188_v29, 0  ;;  %v200_v25 = vld [vmem:[%s1538_s22 + $0x170] sm:$0xff]  ;;  %v201_v30 = vld [vmem:[%s1538_s22 + $0x178] sm:$0xff] }
  0x6f   : > { %430 = vst [vmem:[%s1554_s16 + $0xf0] sm:$0xff] %v793_v35  ;;  %v803_v42 = vcvt.f32.s32 %v802_v40  ;;  %v810_v43 = vceil.f32 %v188_v29  ;;  %v811_v44 = vfloor.f32 %v188_v29  ;;  %vm814_vm3 = vcmp.lt.s32.totalorder %v189_v34, 0 }
  0x70   : > { %431 = vst [vmem:[%s1554_s16 + $0xf8] sm:$0xff] %v798_v39  ;;  %v807_v46 = vsel %vm804_vm1, %v805_v37, %v806_v41  ;;  %v815_v47 = vceil.f32 %v189_v34  ;;  %v816_v48 = vfloor.f32 %v189_v34  ;;  %vm819_vm4 = vcmp.lt.s32.totalorder %v190_v38, 0  ;;  %v202_v34 = vld [vmem:[%s1538_s22 + $0x180] sm:$0xff]  ;;  %v203_v41 = vld [vmem:[%s1538_s22 + $0x188] sm:$0xff] }
  0x71   : > { %432 = vst [vmem:[%s1554_s16 + $0x100] sm:$0xff] %v803_v42  ;;  %v808_v50 = vcvt.f32.s32 %v807_v46  ;;  %v812_v51 = vsel %vm809_vm2, %v810_v43, %v811_v44  ;;  %v820_v52 = vceil.f32 %v190_v38  ;;  %v821_v53 = vfloor.f32 %v190_v38 }
  0x72   : > { %v813_v55 = vcvt.f32.s32 %v812_v51  ;;  %v817_v56 = vsel %vm814_vm3, %v815_v47, %v816_v48  ;;  %vm824_vm5 = vcmp.lt.s32.totalorder %v191_v45, 0  ;;  %v825_v57 = vceil.f32 %v191_v45 }
  0x73   : > { %433 = vst [vmem:[%s1554_s16 + $0x108] sm:$0xff] %v808_v50  ;;  %v818_v59 = vcvt.f32.s32 %v817_v56  ;;  %v822_v60 = vsel %vm819_vm4, %v820_v52, %v821_v53  ;;  %v826_v61 = vfloor.f32 %v191_v45  ;;  %vm829_vm6 = vcmp.lt.s32.totalorder %v192_v49, 0  ;;  %v204_v45 = vld [vmem:[%s1538_s22 + $0x190] sm:$0xff]  ;;  %v205_v50 = vld [vmem:[%s1538_s22 + $0x198] sm:$0xff] }
  0x74   : > { %434 = vst [vmem:[%s1554_s16 + $0x110] sm:$0xff] %v813_v55  ;;  %v823_v62 = vcvt.f32.s32 %v822_v60  ;;  %v830_v63 = vceil.f32 %v192_v49  ;;  %v831_v0 = vfloor.f32 %v192_v49  ;;  %vm834_vm7 = vcmp.lt.s32.totalorder %v193_v54, 0 }
  0x75   : > { %435 = vst [vmem:[%s1554_s16 + $0x118] sm:$0xff] %v818_v59  ;;  %v827_v2 = vsel %vm824_vm5, %v825_v57, %v826_v61  ;;  %v835_v3 = vceil.f32 %v193_v54  ;;  %v836_v4 = vfloor.f32 %v193_v54  ;;  %vm839_vm8 = vcmp.lt.s32.totalorder %v194_v58, 0  ;;  %v206_v54 = vld [vmem:[%s1538_s22 + $0x1a0] sm:$0xff]  ;;  %v207_v61 = vld [vmem:[%s1538_s22 + $0x1a8] sm:$0xff] }
  0x76   : > { %436 = vst [vmem:[%s1554_s16 + $0x120] sm:$0xff] %v823_v62  ;;  %v828_v6 = vcvt.f32.s32 %v827_v2  ;;  %v832_v7 = vsel %vm829_vm6, %v830_v63, %v831_v0  ;;  %v840_v8 = vceil.f32 %v194_v58  ;;  %v841_v9 = vfloor.f32 %v194_v58 }
  0x77   : > { %v833_v11 = vcvt.f32.s32 %v832_v7  ;;  %v837_v12 = vsel %vm834_vm7, %v835_v3, %v836_v4  ;;  %vm844_vm9 = vcmp.lt.s32.totalorder %v195_v1, 0  ;;  %v845_v13 = vceil.f32 %v195_v1 }
  0x78   : > { %437 = vst [vmem:[%s1554_s16 + $0x128] sm:$0xff] %v828_v6  ;;  %v838_v15 = vcvt.f32.s32 %v837_v12  ;;  %v842_v16 = vsel %vm839_vm8, %v840_v8, %v841_v9  ;;  %v846_v17 = vfloor.f32 %v195_v1  ;;  %vm849_vm10 = vcmp.lt.s32.totalorder %v196_v5, 0  ;;  %v208_v1 = vld [vmem:[%s1538_s22 + $0x1b0] sm:$0xff]  ;;  %v209_v6 = vld [vmem:[%s1538_s22 + $0x1b8] sm:$0xff] }
  0x79   : > { %438 = vst [vmem:[%s1554_s16 + $0x130] sm:$0xff] %v833_v11  ;;  %v843_v18 = vcvt.f32.s32 %v842_v16  ;;  %v850_v19 = vceil.f32 %v196_v5  ;;  %v851_v20 = vfloor.f32 %v196_v5  ;;  %vm854_vm11 = vcmp.lt.s32.totalorder %v197_v10, 0 }
  0x7a   : > { %439 = vst [vmem:[%s1554_s16 + $0x138] sm:$0xff] %v838_v15  ;;  %v847_v22 = vsel %vm844_vm9, %v845_v13, %v846_v17  ;;  %v855_v23 = vceil.f32 %v197_v10  ;;  %v856_v24 = vfloor.f32 %v197_v10  ;;  %vm859_vm12 = vcmp.lt.s32.totalorder %v198_v14, 0  ;;  %v210_v10 = vld [vmem:[%s1538_s22 + $0x1c0] sm:$0xff]  ;;  %v211_v17 = vld [vmem:[%s1538_s22 + $0x1c8] sm:$0xff] }
  0x7b   : > { %440 = vst [vmem:[%s1554_s16 + $0x140] sm:$0xff] %v843_v18  ;;  %v848_v26 = vcvt.f32.s32 %v847_v22  ;;  %v852_v27 = vsel %vm849_vm10, %v850_v19, %v851_v20  ;;  %v860_v28 = vceil.f32 %v198_v14  ;;  %v861_v29 = vfloor.f32 %v198_v14 }
  0x7c   : > { %v853_v31 = vcvt.f32.s32 %v852_v27  ;;  %v857_v32 = vsel %vm854_vm11, %v855_v23, %v856_v24  ;;  %vm864_vm13 = vcmp.lt.s32.totalorder %v199_v21, 0  ;;  %v865_v33 = vceil.f32 %v199_v21 }
  0x7d   : > { %441 = vst [vmem:[%s1554_s16 + $0x148] sm:$0xff] %v848_v26  ;;  %v858_v35 = vcvt.f32.s32 %v857_v32  ;;  %v862_v36 = vsel %vm859_vm12, %v860_v28, %v861_v29  ;;  %v866_v37 = vfloor.f32 %v199_v21  ;;  %vm869_vm14 = vcmp.lt.s32.totalorder %v200_v25, 0  ;;  %v212_v21 = vld [vmem:[%s1538_s22 + $0x1d0] sm:$0xff]  ;;  %v213_v26 = vld [vmem:[%s1538_s22 + $0x1d8] sm:$0xff] }
  0x7e   : > { %442 = vst [vmem:[%s1554_s16 + $0x150] sm:$0xff] %v853_v31  ;;  %v863_v38 = vcvt.f32.s32 %v862_v36  ;;  %v870_v39 = vceil.f32 %v200_v25  ;;  %v871_v40 = vfloor.f32 %v200_v25  ;;  %vm874_vm15 = vcmp.lt.s32.totalorder %v201_v30, 0 }
  0x7f   : > { %443 = vst [vmem:[%s1554_s16 + $0x158] sm:$0xff] %v858_v35  ;;  %v867_v42 = vsel %vm864_vm13, %v865_v33, %v866_v37  ;;  %v875_v43 = vceil.f32 %v201_v30  ;;  %v876_v44 = vfloor.f32 %v201_v30  ;;  %vm879_vm0 = vcmp.lt.s32.totalorder %v202_v34, 0  ;;  %v214_v30 = vld [vmem:[%s1538_s22 + $0x1e0] sm:$0xff]  ;;  %v215_v37 = vld [vmem:[%s1538_s22 + $0x1e8] sm:$0xff] }
  0x80   : > { %444 = vst [vmem:[%s1554_s16 + $0x160] sm:$0xff] %v863_v38  ;;  %v868_v46 = vcvt.f32.s32 %v867_v42  ;;  %v872_v47 = vsel %vm869_vm14, %v870_v39, %v871_v40  ;;  %v880_v48 = vceil.f32 %v202_v34  ;;  %v881_v49 = vfloor.f32 %v202_v34 }
  0x81   : > { %v873_v51 = vcvt.f32.s32 %v872_v47  ;;  %v877_v52 = vsel %vm874_vm15, %v875_v43, %v876_v44  ;;  %vm884_vm1 = vcmp.lt.s32.totalorder %v203_v41, 0  ;;  %v885_v53 = vceil.f32 %v203_v41 }
  0x82   : > { %445 = vst [vmem:[%s1554_s16 + $0x168] sm:$0xff] %v868_v46  ;;  %v878_v55 = vcvt.f32.s32 %v877_v52  ;;  %v882_v56 = vsel %vm879_vm0, %v880_v48, %v881_v49  ;;  %v886_v57 = vfloor.f32 %v203_v41  ;;  %vm889_vm2 = vcmp.lt.s32.totalorder %v204_v45, 0  ;;  %v216_v41 = vld [vmem:[%s1538_s22 + $0x1f0] sm:$0xff]  ;;  %v217_v46 = vld [vmem:[%s1538_s22 + $0x1f8] sm:$0xff] }
  0x83   : > { %446 = vst [vmem:[%s1554_s16 + $0x170] sm:$0xff] %v873_v51  ;;  %v883_v58 = vcvt.f32.s32 %v882_v56  ;;  %v890_v59 = vceil.f32 %v204_v45  ;;  %v891_v60 = vfloor.f32 %v204_v45  ;;  %vm894_vm3 = vcmp.lt.s32.totalorder %v205_v50, 0 }
  0x84   : > { %447 = vst [vmem:[%s1554_s16 + $0x178] sm:$0xff] %v878_v55  ;;  %v887_v62 = vsel %vm884_vm1, %v885_v53, %v886_v57  ;;  %v895_v63 = vceil.f32 %v205_v50  ;;  %v896_v0 = vfloor.f32 %v205_v50  ;;  %vm899_vm4 = vcmp.lt.s32.totalorder %v206_v54, 0  ;;  %v218_v50 = vld [vmem:[%s1538_s22 + $0x200] sm:$0xff]  ;;  %v219_v57 = vld [vmem:[%s1538_s22 + $0x208] sm:$0xff] }
  0x85   : > { %448 = vst [vmem:[%s1554_s16 + $0x180] sm:$0xff] %v883_v58  ;;  %v888_v2 = vcvt.f32.s32 %v887_v62  ;;  %v892_v3 = vsel %vm889_vm2, %v890_v59, %v891_v60  ;;  %v900_v4 = vceil.f32 %v206_v54  ;;  %v901_v5 = vfloor.f32 %v206_v54 }
  0x86   : > { %v893_v7 = vcvt.f32.s32 %v892_v3  ;;  %v897_v8 = vsel %vm894_vm3, %v895_v63, %v896_v0  ;;  %vm904_vm5 = vcmp.lt.s32.totalorder %v207_v61, 0  ;;  %v905_v9 = vceil.f32 %v207_v61 }
  0x87   : > { %449 = vst [vmem:[%s1554_s16 + $0x188] sm:$0xff] %v888_v2  ;;  %v898_v11 = vcvt.f32.s32 %v897_v8  ;;  %v902_v12 = vsel %vm899_vm4, %v900_v4, %v901_v5  ;;  %v906_v13 = vfloor.f32 %v207_v61  ;;  %vm909_vm6 = vcmp.lt.s32.totalorder %v208_v1, 0  ;;  %v220_v61 = vld [vmem:[%s1538_s22 + $0x210] sm:$0xff]  ;;  %v221_v2 = vld [vmem:[%s1538_s22 + $0x218] sm:$0xff] }
  0x88   : > { %450 = vst [vmem:[%s1554_s16 + $0x190] sm:$0xff] %v893_v7  ;;  %v903_v14 = vcvt.f32.s32 %v902_v12  ;;  %v910_v15 = vceil.f32 %v208_v1  ;;  %v911_v16 = vfloor.f32 %v208_v1  ;;  %vm914_vm7 = vcmp.lt.s32.totalorder %v209_v6, 0 }
  0x89   : > { %451 = vst [vmem:[%s1554_s16 + $0x198] sm:$0xff] %v898_v11  ;;  %v907_v18 = vsel %vm904_vm5, %v905_v9, %v906_v13  ;;  %v915_v19 = vceil.f32 %v209_v6  ;;  %v916_v20 = vfloor.f32 %v209_v6  ;;  %vm919_vm8 = vcmp.lt.s32.totalorder %v210_v10, 0  ;;  %v222_v6 = vld [vmem:[%s1538_s22 + $0x220] sm:$0xff]  ;;  %v223_v13 = vld [vmem:[%s1538_s22 + $0x228] sm:$0xff] }
  0x8a   : > { %452 = vst [vmem:[%s1554_s16 + $0x1a0] sm:$0xff] %v903_v14  ;;  %v908_v22 = vcvt.f32.s32 %v907_v18  ;;  %v912_v23 = vsel %vm909_vm6, %v910_v15, %v911_v16  ;;  %v920_v24 = vceil.f32 %v210_v10  ;;  %v921_v25 = vfloor.f32 %v210_v10 }
  0x8b   : > { %v913_v27 = vcvt.f32.s32 %v912_v23  ;;  %v917_v28 = vsel %vm914_vm7, %v915_v19, %v916_v20  ;;  %vm924_vm9 = vcmp.lt.s32.totalorder %v211_v17, 0  ;;  %v925_v29 = vceil.f32 %v211_v17 }
  0x8c   : > { %453 = vst [vmem:[%s1554_s16 + $0x1a8] sm:$0xff] %v908_v22  ;;  %v918_v31 = vcvt.f32.s32 %v917_v28  ;;  %v922_v32 = vsel %vm919_vm8, %v920_v24, %v921_v25  ;;  %v926_v33 = vfloor.f32 %v211_v17  ;;  %vm929_vm10 = vcmp.lt.s32.totalorder %v212_v21, 0  ;;  %v224_v17 = vld [vmem:[%s1538_s22 + $0x230] sm:$0xff]  ;;  %v225_v22 = vld [vmem:[%s1538_s22 + $0x238] sm:$0xff] }
  0x8d   : > { %454 = vst [vmem:[%s1554_s16 + $0x1b0] sm:$0xff] %v913_v27  ;;  %v923_v34 = vcvt.f32.s32 %v922_v32  ;;  %v930_v35 = vceil.f32 %v212_v21  ;;  %v931_v36 = vfloor.f32 %v212_v21  ;;  %vm934_vm11 = vcmp.lt.s32.totalorder %v213_v26, 0 }
  0x8e   : > { %455 = vst [vmem:[%s1554_s16 + $0x1b8] sm:$0xff] %v918_v31  ;;  %v927_v38 = vsel %vm924_vm9, %v925_v29, %v926_v33  ;;  %v935_v39 = vceil.f32 %v213_v26  ;;  %v936_v40 = vfloor.f32 %v213_v26  ;;  %vm939_vm12 = vcmp.lt.s32.totalorder %v214_v30, 0  ;;  %v226_v26 = vld [vmem:[%s1538_s22 + $0x240] sm:$0xff]  ;;  %v227_v33 = vld [vmem:[%s1538_s22 + $0x248] sm:$0xff] }
  0x8f   : > { %456 = vst [vmem:[%s1554_s16 + $0x1c0] sm:$0xff] %v923_v34  ;;  %v928_v42 = vcvt.f32.s32 %v927_v38  ;;  %v932_v43 = vsel %vm929_vm10, %v930_v35, %v931_v36  ;;  %v940_v44 = vceil.f32 %v214_v30  ;;  %v941_v45 = vfloor.f32 %v214_v30 }
  0x90   : > { %v933_v47 = vcvt.f32.s32 %v932_v43  ;;  %v937_v48 = vsel %vm934_vm11, %v935_v39, %v936_v40  ;;  %vm944_vm13 = vcmp.lt.s32.totalorder %v215_v37, 0  ;;  %v945_v49 = vceil.f32 %v215_v37 }
  0x91   : > { %457 = vst [vmem:[%s1554_s16 + $0x1c8] sm:$0xff] %v928_v42  ;;  %v938_v51 = vcvt.f32.s32 %v937_v48  ;;  %v942_v52 = vsel %vm939_vm12, %v940_v44, %v941_v45  ;;  %v946_v53 = vfloor.f32 %v215_v37  ;;  %vm949_vm14 = vcmp.lt.s32.totalorder %v216_v41, 0  ;;  %v228_v37 = vld [vmem:[%s1538_s22 + $0x250] sm:$0xff]  ;;  %v229_v42 = vld [vmem:[%s1538_s22 + $0x258] sm:$0xff] }
  0x92   : > { %458 = vst [vmem:[%s1554_s16 + $0x1d0] sm:$0xff] %v933_v47  ;;  %v943_v54 = vcvt.f32.s32 %v942_v52  ;;  %v950_v55 = vceil.f32 %v216_v41  ;;  %v951_v56 = vfloor.f32 %v216_v41  ;;  %vm954_vm15 = vcmp.lt.s32.totalorder %v217_v46, 0 }
  0x93   : > { %459 = vst [vmem:[%s1554_s16 + $0x1d8] sm:$0xff] %v938_v51  ;;  %v947_v58 = vsel %vm944_vm13, %v945_v49, %v946_v53  ;;  %v955_v59 = vceil.f32 %v217_v46  ;;  %v956_v60 = vfloor.f32 %v217_v46  ;;  %vm959_vm0 = vcmp.lt.s32.totalorder %v218_v50, 0  ;;  %v230_v46 = vld [vmem:[%s1538_s22 + $0x260] sm:$0xff]  ;;  %v231_v53 = vld [vmem:[%s1538_s22 + $0x268] sm:$0xff] }
  0x94   : > { %460 = vst [vmem:[%s1554_s16 + $0x1e0] sm:$0xff] %v943_v54  ;;  %v948_v62 = vcvt.f32.s32 %v947_v58  ;;  %v952_v63 = vsel %vm949_vm14, %v950_v55, %v951_v56  ;;  %v960_v0 = vceil.f32 %v218_v50  ;;  %v961_v1 = vfloor.f32 %v218_v50 }
  0x95   : > { %v953_v3 = vcvt.f32.s32 %v952_v63  ;;  %v957_v4 = vsel %vm954_vm15, %v955_v59, %v956_v60  ;;  %vm964_vm1 = vcmp.lt.s32.totalorder %v219_v57, 0  ;;  %v965_v5 = vceil.f32 %v219_v57 }
  0x96   : > { %461 = vst [vmem:[%s1554_s16 + $0x1e8] sm:$0xff] %v948_v62  ;;  %v958_v7 = vcvt.f32.s32 %v957_v4  ;;  %v962_v8 = vsel %vm959_vm0, %v960_v0, %v961_v1  ;;  %v966_v9 = vfloor.f32 %v219_v57  ;;  %vm969_vm2 = vcmp.lt.s32.totalorder %v220_v61, 0  ;;  %v232_v57 = vld [vmem:[%s1538_s22 + $0x270] sm:$0xff]  ;;  %v233_v62 = vld [vmem:[%s1538_s22 + $0x278] sm:$0xff] }
  0x97   : > { %462 = vst [vmem:[%s1554_s16 + $0x1f0] sm:$0xff] %v953_v3  ;;  %v963_v10 = vcvt.f32.s32 %v962_v8  ;;  %v970_v11 = vceil.f32 %v220_v61  ;;  %v971_v12 = vfloor.f32 %v220_v61  ;;  %vm974_vm3 = vcmp.lt.s32.totalorder %v221_v2, 0 }
  0x98   : > { %463 = vst [vmem:[%s1554_s16 + $0x1f8] sm:$0xff] %v958_v7  ;;  %v967_v14 = vsel %vm964_vm1, %v965_v5, %v966_v9  ;;  %v975_v15 = vceil.f32 %v221_v2  ;;  %v976_v16 = vfloor.f32 %v221_v2  ;;  %vm979_vm4 = vcmp.lt.s32.totalorder %v222_v6, 0  ;;  %v234_v2 = vld [vmem:[%s1538_s22 + $0x280] sm:$0xff]  ;;  %v235_v9 = vld [vmem:[%s1538_s22 + $0x288] sm:$0xff] }
  0x99   : > { %464 = vst [vmem:[%s1554_s16 + $0x200] sm:$0xff] %v963_v10  ;;  %v968_v18 = vcvt.f32.s32 %v967_v14  ;;  %v972_v19 = vsel %vm969_vm2, %v970_v11, %v971_v12  ;;  %v980_v20 = vceil.f32 %v222_v6  ;;  %v981_v21 = vfloor.f32 %v222_v6 }
  0x9a   : > { %v973_v23 = vcvt.f32.s32 %v972_v19  ;;  %v977_v24 = vsel %vm974_vm3, %v975_v15, %v976_v16  ;;  %vm984_vm5 = vcmp.lt.s32.totalorder %v223_v13, 0  ;;  %v985_v25 = vceil.f32 %v223_v13 }
  0x9b   : > { %465 = vst [vmem:[%s1554_s16 + $0x208] sm:$0xff] %v968_v18  ;;  %v978_v27 = vcvt.f32.s32 %v977_v24  ;;  %v982_v28 = vsel %vm979_vm4, %v980_v20, %v981_v21  ;;  %v986_v29 = vfloor.f32 %v223_v13  ;;  %vm989_vm6 = vcmp.lt.s32.totalorder %v224_v17, 0  ;;  %v236_v13 = vld [vmem:[%s1538_s22 + $0x290] sm:$0xff]  ;;  %v237_v18 = vld [vmem:[%s1538_s22 + $0x298] sm:$0xff] }
  0x9c   : > { %466 = vst [vmem:[%s1554_s16 + $0x210] sm:$0xff] %v973_v23  ;;  %v983_v30 = vcvt.f32.s32 %v982_v28  ;;  %v990_v31 = vceil.f32 %v224_v17  ;;  %v991_v32 = vfloor.f32 %v224_v17  ;;  %vm994_vm7 = vcmp.lt.s32.totalorder %v225_v22, 0 }
  0x9d   : > { %467 = vst [vmem:[%s1554_s16 + $0x218] sm:$0xff] %v978_v27  ;;  %v987_v34 = vsel %vm984_vm5, %v985_v25, %v986_v29  ;;  %v995_v35 = vceil.f32 %v225_v22  ;;  %v996_v36 = vfloor.f32 %v225_v22  ;;  %vm999_vm8 = vcmp.lt.s32.totalorder %v226_v26, 0  ;;  %v238_v22 = vld [vmem:[%s1538_s22 + $0x2a0] sm:$0xff]  ;;  %v239_v29 = vld [vmem:[%s1538_s22 + $0x2a8] sm:$0xff] }
  0x9e   : > { %468 = vst [vmem:[%s1554_s16 + $0x220] sm:$0xff] %v983_v30  ;;  %v988_v38 = vcvt.f32.s32 %v987_v34  ;;  %v992_v39 = vsel %vm989_vm6, %v990_v31, %v991_v32  ;;  %v1000_v40 = vceil.f32 %v226_v26  ;;  %v1001_v41 = vfloor.f32 %v226_v26 }
  0x9f   : > { %v993_v43 = vcvt.f32.s32 %v992_v39  ;;  %v997_v44 = vsel %vm994_vm7, %v995_v35, %v996_v36  ;;  %vm1004_vm9 = vcmp.lt.s32.totalorder %v227_v33, 0  ;;  %v1005_v45 = vceil.f32 %v227_v33 }
  0xa0   : > { %469 = vst [vmem:[%s1554_s16 + $0x228] sm:$0xff] %v988_v38  ;;  %v998_v47 = vcvt.f32.s32 %v997_v44  ;;  %v1002_v48 = vsel %vm999_vm8, %v1000_v40, %v1001_v41  ;;  %v1006_v49 = vfloor.f32 %v227_v33  ;;  %vm1009_vm10 = vcmp.lt.s32.totalorder %v228_v37, 0  ;;  %v240_v33 = vld [vmem:[%s1538_s22 + $0x2b0] sm:$0xff]  ;;  %v241_v38 = vld [vmem:[%s1538_s22 + $0x2b8] sm:$0xff] }
  0xa1   : > { %470 = vst [vmem:[%s1554_s16 + $0x230] sm:$0xff] %v993_v43  ;;  %v1003_v50 = vcvt.f32.s32 %v1002_v48  ;;  %v1010_v51 = vceil.f32 %v228_v37  ;;  %v1011_v52 = vfloor.f32 %v228_v37  ;;  %vm1014_vm11 = vcmp.lt.s32.totalorder %v229_v42, 0 }
  0xa2   : > { %471 = vst [vmem:[%s1554_s16 + $0x238] sm:$0xff] %v998_v47  ;;  %v1007_v54 = vsel %vm1004_vm9, %v1005_v45, %v1006_v49  ;;  %v1015_v55 = vceil.f32 %v229_v42  ;;  %v1016_v56 = vfloor.f32 %v229_v42  ;;  %vm1019_vm12 = vcmp.lt.s32.totalorder %v230_v46, 0  ;;  %v242_v42 = vld [vmem:[%s1538_s22 + $0x2c0] sm:$0xff]  ;;  %v243_v49 = vld [vmem:[%s1538_s22 + $0x2c8] sm:$0xff] }
  0xa3   : > { %472 = vst [vmem:[%s1554_s16 + $0x240] sm:$0xff] %v1003_v50  ;;  %v1008_v58 = vcvt.f32.s32 %v1007_v54  ;;  %v1012_v59 = vsel %vm1009_vm10, %v1010_v51, %v1011_v52  ;;  %v1020_v60 = vceil.f32 %v230_v46  ;;  %v1021_v61 = vfloor.f32 %v230_v46 }
  0xa4   : > { %v1013_v63 = vcvt.f32.s32 %v1012_v59  ;;  %v1017_v0 = vsel %vm1014_vm11, %v1015_v55, %v1016_v56  ;;  %vm1024_vm13 = vcmp.lt.s32.totalorder %v231_v53, 0  ;;  %v1025_v1 = vceil.f32 %v231_v53 }
  0xa5   : > { %473 = vst [vmem:[%s1554_s16 + $0x248] sm:$0xff] %v1008_v58  ;;  %v1018_v3 = vcvt.f32.s32 %v1017_v0  ;;  %v1022_v4 = vsel %vm1019_vm12, %v1020_v60, %v1021_v61  ;;  %v1026_v5 = vfloor.f32 %v231_v53  ;;  %vm1029_vm14 = vcmp.lt.s32.totalorder %v232_v57, 0  ;;  %v244_v53 = vld [vmem:[%s1538_s22 + $0x2d0] sm:$0xff]  ;;  %v245_v58 = vld [vmem:[%s1538_s22 + $0x2d8] sm:$0xff] }
  0xa6   : > { %474 = vst [vmem:[%s1554_s16 + $0x250] sm:$0xff] %v1013_v63  ;;  %v1023_v6 = vcvt.f32.s32 %v1022_v4  ;;  %v1030_v7 = vceil.f32 %v232_v57  ;;  %v1031_v8 = vfloor.f32 %v232_v57  ;;  %vm1034_vm15 = vcmp.lt.s32.totalorder %v233_v62, 0 }
  0xa7   : > { %475 = vst [vmem:[%s1554_s16 + $0x258] sm:$0xff] %v1018_v3  ;;  %v1027_v10 = vsel %vm1024_vm13, %v1025_v1, %v1026_v5  ;;  %v1035_v11 = vceil.f32 %v233_v62  ;;  %v1036_v12 = vfloor.f32 %v233_v62  ;;  %vm1039_vm0 = vcmp.lt.s32.totalorder %v234_v2, 0  ;;  %v246_v62 = vld [vmem:[%s1538_s22 + $0x2e0] sm:$0xff]  ;;  %v247_v5 = vld [vmem:[%s1538_s22 + $0x2e8] sm:$0xff] }
  0xa8   : > { %476 = vst [vmem:[%s1554_s16 + $0x260] sm:$0xff] %v1023_v6  ;;  %v1028_v14 = vcvt.f32.s32 %v1027_v10  ;;  %v1032_v15 = vsel %vm1029_vm14, %v1030_v7, %v1031_v8  ;;  %v1040_v16 = vceil.f32 %v234_v2  ;;  %v1041_v17 = vfloor.f32 %v234_v2 }
  0xa9   : > { %v1033_v19 = vcvt.f32.s32 %v1032_v15  ;;  %v1037_v20 = vsel %vm1034_vm15, %v1035_v11, %v1036_v12  ;;  %vm1044_vm1 = vcmp.lt.s32.totalorder %v235_v9, 0  ;;  %v1045_v21 = vceil.f32 %v235_v9 }
  0xaa   : > { %477 = vst [vmem:[%s1554_s16 + $0x268] sm:$0xff] %v1028_v14  ;;  %v1038_v23 = vcvt.f32.s32 %v1037_v20  ;;  %v1042_v24 = vsel %vm1039_vm0, %v1040_v16, %v1041_v17  ;;  %v1046_v25 = vfloor.f32 %v235_v9  ;;  %vm1049_vm2 = vcmp.lt.s32.totalorder %v236_v13, 0  ;;  %v248_v9 = vld [vmem:[%s1538_s22 + $0x2f0] sm:$0xff]  ;;  %v249_v14 = vld [vmem:[%s1538_s22 + $0x2f8] sm:$0xff] }
  0xab   : > { %478 = vst [vmem:[%s1554_s16 + $0x270] sm:$0xff] %v1033_v19  ;;  %v1043_v26 = vcvt.f32.s32 %v1042_v24  ;;  %v1050_v27 = vceil.f32 %v236_v13  ;;  %v1051_v28 = vfloor.f32 %v236_v13  ;;  %vm1054_vm3 = vcmp.lt.s32.totalorder %v237_v18, 0 }
  0xac   : > { %479 = vst [vmem:[%s1554_s16 + $0x278] sm:$0xff] %v1038_v23  ;;  %v1047_v30 = vsel %vm1044_vm1, %v1045_v21, %v1046_v25  ;;  %v1055_v31 = vceil.f32 %v237_v18  ;;  %v1056_v32 = vfloor.f32 %v237_v18  ;;  %vm1059_vm4 = vcmp.lt.s32.totalorder %v238_v22, 0  ;;  %v250_v18 = vld [vmem:[%s1538_s22 + $0x300] sm:$0xff]  ;;  %v251_v25 = vld [vmem:[%s1538_s22 + $0x308] sm:$0xff] }
  0xad   : > { %480 = vst [vmem:[%s1554_s16 + $0x280] sm:$0xff] %v1043_v26  ;;  %v1048_v34 = vcvt.f32.s32 %v1047_v30  ;;  %v1052_v35 = vsel %vm1049_vm2, %v1050_v27, %v1051_v28  ;;  %v1060_v36 = vceil.f32 %v238_v22  ;;  %v1061_v37 = vfloor.f32 %v238_v22 }
  0xae   : > { %v1053_v39 = vcvt.f32.s32 %v1052_v35  ;;  %v1057_v40 = vsel %vm1054_vm3, %v1055_v31, %v1056_v32  ;;  %vm1064_vm5 = vcmp.lt.s32.totalorder %v239_v29, 0  ;;  %v1065_v41 = vceil.f32 %v239_v29 }
  0xaf   : > { %481 = vst [vmem:[%s1554_s16 + $0x288] sm:$0xff] %v1048_v34  ;;  %v1058_v43 = vcvt.f32.s32 %v1057_v40  ;;  %v1062_v44 = vsel %vm1059_vm4, %v1060_v36, %v1061_v37  ;;  %v1066_v45 = vfloor.f32 %v239_v29  ;;  %vm1069_vm6 = vcmp.lt.s32.totalorder %v240_v33, 0  ;;  %v252_v29 = vld [vmem:[%s1538_s22 + $0x310] sm:$0xff]  ;;  %v253_v34 = vld [vmem:[%s1538_s22 + $0x318] sm:$0xff] }
  0xb0   : > { %482 = vst [vmem:[%s1554_s16 + $0x290] sm:$0xff] %v1053_v39  ;;  %v1063_v46 = vcvt.f32.s32 %v1062_v44  ;;  %v1070_v47 = vceil.f32 %v240_v33  ;;  %v1071_v48 = vfloor.f32 %v240_v33  ;;  %vm1074_vm7 = vcmp.lt.s32.totalorder %v241_v38, 0 }
  0xb1   : > { %483 = vst [vmem:[%s1554_s16 + $0x298] sm:$0xff] %v1058_v43  ;;  %v1067_v50 = vsel %vm1064_vm5, %v1065_v41, %v1066_v45  ;;  %v1075_v51 = vceil.f32 %v241_v38  ;;  %v1076_v52 = vfloor.f32 %v241_v38  ;;  %vm1079_vm8 = vcmp.lt.s32.totalorder %v242_v42, 0  ;;  %v254_v38 = vld [vmem:[%s1538_s22 + $0x320] sm:$0xff]  ;;  %v255_v45 = vld [vmem:[%s1538_s22 + $0x328] sm:$0xff] }
  0xb2   : > { %484 = vst [vmem:[%s1554_s16 + $0x2a0] sm:$0xff] %v1063_v46  ;;  %v1068_v54 = vcvt.f32.s32 %v1067_v50  ;;  %v1072_v55 = vsel %vm1069_vm6, %v1070_v47, %v1071_v48  ;;  %v1080_v56 = vceil.f32 %v242_v42  ;;  %v1081_v57 = vfloor.f32 %v242_v42 }
  0xb3   : > { %v1073_v59 = vcvt.f32.s32 %v1072_v55  ;;  %v1077_v60 = vsel %vm1074_vm7, %v1075_v51, %v1076_v52  ;;  %vm1084_vm9 = vcmp.lt.s32.totalorder %v243_v49, 0  ;;  %v1085_v61 = vceil.f32 %v243_v49 }
  0xb4   : > { %485 = vst [vmem:[%s1554_s16 + $0x2a8] sm:$0xff] %v1068_v54  ;;  %v1078_v63 = vcvt.f32.s32 %v1077_v60  ;;  %v1082_v0 = vsel %vm1079_vm8, %v1080_v56, %v1081_v57  ;;  %v1086_v1 = vfloor.f32 %v243_v49  ;;  %vm1089_vm10 = vcmp.lt.s32.totalorder %v244_v53, 0  ;;  %v256_v49 = vld [vmem:[%s1538_s22 + $0x330] sm:$0xff]  ;;  %v257_v54 = vld [vmem:[%s1538_s22 + $0x338] sm:$0xff] }
  0xb5   : > { %486 = vst [vmem:[%s1554_s16 + $0x2b0] sm:$0xff] %v1073_v59  ;;  %v1083_v2 = vcvt.f32.s32 %v1082_v0  ;;  %v1090_v3 = vceil.f32 %v244_v53  ;;  %v1091_v4 = vfloor.f32 %v244_v53  ;;  %vm1094_vm11 = vcmp.lt.s32.totalorder %v245_v58, 0 }
  0xb6   : > { %487 = vst [vmem:[%s1554_s16 + $0x2b8] sm:$0xff] %v1078_v63  ;;  %v1087_v6 = vsel %vm1084_vm9, %v1085_v61, %v1086_v1  ;;  %v1095_v7 = vceil.f32 %v245_v58  ;;  %v1096_v8 = vfloor.f32 %v245_v58  ;;  %vm1099_vm12 = vcmp.lt.s32.totalorder %v246_v62, 0  ;;  %v258_v58 = vld [vmem:[%s1538_s22 + $0x340] sm:$0xff]  ;;  %v259_v1 = vld [vmem:[%s1538_s22 + $0x348] sm:$0xff] }
  0xb7   : > { %488 = vst [vmem:[%s1554_s16 + $0x2c0] sm:$0xff] %v1083_v2  ;;  %v1088_v10 = vcvt.f32.s32 %v1087_v6  ;;  %v1092_v11 = vsel %vm1089_vm10, %v1090_v3, %v1091_v4  ;;  %v1100_v12 = vceil.f32 %v246_v62  ;;  %v1101_v13 = vfloor.f32 %v246_v62 }
  0xb8   : > { %v1093_v15 = vcvt.f32.s32 %v1092_v11  ;;  %v1097_v16 = vsel %vm1094_vm11, %v1095_v7, %v1096_v8  ;;  %vm1104_vm13 = vcmp.lt.s32.totalorder %v247_v5, 0  ;;  %v1105_v17 = vceil.f32 %v247_v5 }
  0xb9   : > { %489 = vst [vmem:[%s1554_s16 + $0x2c8] sm:$0xff] %v1088_v10  ;;  %v1098_v19 = vcvt.f32.s32 %v1097_v16  ;;  %v1102_v20 = vsel %vm1099_vm12, %v1100_v12, %v1101_v13  ;;  %v1106_v21 = vfloor.f32 %v247_v5  ;;  %vm1109_vm14 = vcmp.lt.s32.totalorder %v248_v9, 0  ;;  %v260_v5 = vld [vmem:[%s1538_s22 + $0x350] sm:$0xff]  ;;  %v261_v10 = vld [vmem:[%s1538_s22 + $0x358] sm:$0xff] }
  0xba   : > { %490 = vst [vmem:[%s1554_s16 + $0x2d0] sm:$0xff] %v1093_v15  ;;  %v1103_v22 = vcvt.f32.s32 %v1102_v20  ;;  %v1110_v23 = vceil.f32 %v248_v9  ;;  %v1111_v24 = vfloor.f32 %v248_v9  ;;  %vm1114_vm15 = vcmp.lt.s32.totalorder %v249_v14, 0 }
  0xbb   : > { %491 = vst [vmem:[%s1554_s16 + $0x2d8] sm:$0xff] %v1098_v19  ;;  %v1107_v26 = vsel %vm1104_vm13, %v1105_v17, %v1106_v21  ;;  %v1115_v27 = vceil.f32 %v249_v14  ;;  %v1116_v28 = vfloor.f32 %v249_v14  ;;  %vm1119_vm0 = vcmp.lt.s32.totalorder %v250_v18, 0  ;;  %v262_v14 = vld [vmem:[%s1538_s22 + $0x360] sm:$0xff]  ;;  %v263_v21 = vld [vmem:[%s1538_s22 + $0x368] sm:$0xff] }
  0xbc   : > { %492 = vst [vmem:[%s1554_s16 + $0x2e0] sm:$0xff] %v1103_v22  ;;  %v1108_v30 = vcvt.f32.s32 %v1107_v26  ;;  %v1112_v31 = vsel %vm1109_vm14, %v1110_v23, %v1111_v24  ;;  %v1120_v32 = vceil.f32 %v250_v18  ;;  %v1121_v33 = vfloor.f32 %v250_v18 }
  0xbd   : > { %v1113_v35 = vcvt.f32.s32 %v1112_v31  ;;  %v1117_v36 = vsel %vm1114_vm15, %v1115_v27, %v1116_v28  ;;  %vm1124_vm1 = vcmp.lt.s32.totalorder %v251_v25, 0  ;;  %v1125_v37 = vceil.f32 %v251_v25 }
  0xbe   : > { %493 = vst [vmem:[%s1554_s16 + $0x2e8] sm:$0xff] %v1108_v30  ;;  %v1118_v39 = vcvt.f32.s32 %v1117_v36  ;;  %v1122_v40 = vsel %vm1119_vm0, %v1120_v32, %v1121_v33  ;;  %v1126_v41 = vfloor.f32 %v251_v25  ;;  %vm1129_vm2 = vcmp.lt.s32.totalorder %v252_v29, 0  ;;  %v264_v25 = vld [vmem:[%s1538_s22 + $0x370] sm:$0xff]  ;;  %v265_v30 = vld [vmem:[%s1538_s22 + $0x378] sm:$0xff] }
  0xbf   : > { %494 = vst [vmem:[%s1554_s16 + $0x2f0] sm:$0xff] %v1113_v35  ;;  %v1123_v42 = vcvt.f32.s32 %v1122_v40  ;;  %v1130_v43 = vceil.f32 %v252_v29  ;;  %v1131_v44 = vfloor.f32 %v252_v29  ;;  %vm1134_vm3 = vcmp.lt.s32.totalorder %v253_v34, 0 }
  0xc0   : > { %495 = vst [vmem:[%s1554_s16 + $0x2f8] sm:$0xff] %v1118_v39  ;;  %v1127_v46 = vsel %vm1124_vm1, %v1125_v37, %v1126_v41  ;;  %v1135_v47 = vceil.f32 %v253_v34  ;;  %v1136_v48 = vfloor.f32 %v253_v34  ;;  %vm1139_vm4 = vcmp.lt.s32.totalorder %v254_v38, 0  ;;  %v266_v34 = vld [vmem:[%s1538_s22 + $0x380] sm:$0xff]  ;;  %v267_v41 = vld [vmem:[%s1538_s22 + $0x388] sm:$0xff] }
  0xc1   : > { %496 = vst [vmem:[%s1554_s16 + $0x300] sm:$0xff] %v1123_v42  ;;  %v1128_v50 = vcvt.f32.s32 %v1127_v46  ;;  %v1132_v51 = vsel %vm1129_vm2, %v1130_v43, %v1131_v44  ;;  %v1140_v52 = vceil.f32 %v254_v38  ;;  %v1141_v53 = vfloor.f32 %v254_v38 }
  0xc2   : > { %v1133_v55 = vcvt.f32.s32 %v1132_v51  ;;  %v1137_v56 = vsel %vm1134_vm3, %v1135_v47, %v1136_v48  ;;  %vm1144_vm5 = vcmp.lt.s32.totalorder %v255_v45, 0  ;;  %v1145_v57 = vceil.f32 %v255_v45 }
  0xc3   : > { %497 = vst [vmem:[%s1554_s16 + $0x308] sm:$0xff] %v1128_v50  ;;  %v1138_v59 = vcvt.f32.s32 %v1137_v56  ;;  %v1142_v60 = vsel %vm1139_vm4, %v1140_v52, %v1141_v53  ;;  %v1146_v61 = vfloor.f32 %v255_v45  ;;  %vm1149_vm6 = vcmp.lt.s32.totalorder %v256_v49, 0  ;;  %v268_v45 = vld [vmem:[%s1538_s22 + $0x390] sm:$0xff]  ;;  %v269_v50 = vld [vmem:[%s1538_s22 + $0x398] sm:$0xff] }
  0xc4   : > { %498 = vst [vmem:[%s1554_s16 + $0x310] sm:$0xff] %v1133_v55  ;;  %v1143_v62 = vcvt.f32.s32 %v1142_v60  ;;  %v1150_v63 = vceil.f32 %v256_v49  ;;  %v1151_v0 = vfloor.f32 %v256_v49  ;;  %vm1154_vm7 = vcmp.lt.s32.totalorder %v257_v54, 0 }
  0xc5   : > { %499 = vst [vmem:[%s1554_s16 + $0x318] sm:$0xff] %v1138_v59  ;;  %v1147_v2 = vsel %vm1144_vm5, %v1145_v57, %v1146_v61  ;;  %v1155_v3 = vceil.f32 %v257_v54  ;;  %v1156_v4 = vfloor.f32 %v257_v54  ;;  %vm1159_vm8 = vcmp.lt.s32.totalorder %v258_v58, 0  ;;  %v270_v54 = vld [vmem:[%s1538_s22 + $0x3a0] sm:$0xff]  ;;  %v271_v61 = vld [vmem:[%s1538_s22 + $0x3a8] sm:$0xff] }
  0xc6   : > { %500 = vst [vmem:[%s1554_s16 + $0x320] sm:$0xff] %v1143_v62  ;;  %v1148_v6 = vcvt.f32.s32 %v1147_v2  ;;  %v1152_v7 = vsel %vm1149_vm6, %v1150_v63, %v1151_v0  ;;  %v1160_v8 = vceil.f32 %v258_v58  ;;  %v1161_v9 = vfloor.f32 %v258_v58 }
  0xc7   : > { %v1153_v11 = vcvt.f32.s32 %v1152_v7  ;;  %v1157_v12 = vsel %vm1154_vm7, %v1155_v3, %v1156_v4  ;;  %vm1164_vm9 = vcmp.lt.s32.totalorder %v259_v1, 0  ;;  %v1165_v13 = vceil.f32 %v259_v1 }
  0xc8   : > { %501 = vst [vmem:[%s1554_s16 + $0x328] sm:$0xff] %v1148_v6  ;;  %v1158_v15 = vcvt.f32.s32 %v1157_v12  ;;  %v1162_v16 = vsel %vm1159_vm8, %v1160_v8, %v1161_v9  ;;  %v1166_v17 = vfloor.f32 %v259_v1  ;;  %vm1169_vm10 = vcmp.lt.s32.totalorder %v260_v5, 0  ;;  %v272_v1 = vld [vmem:[%s1538_s22 + $0x3b0] sm:$0xff]  ;;  %v273_v6 = vld [vmem:[%s1538_s22 + $0x3b8] sm:$0xff] }
  0xc9   : > { %502 = vst [vmem:[%s1554_s16 + $0x330] sm:$0xff] %v1153_v11  ;;  %v1163_v18 = vcvt.f32.s32 %v1162_v16  ;;  %v1170_v19 = vceil.f32 %v260_v5  ;;  %v1171_v20 = vfloor.f32 %v260_v5  ;;  %vm1174_vm11 = vcmp.lt.s32.totalorder %v261_v10, 0 }
  0xca   : > { %503 = vst [vmem:[%s1554_s16 + $0x338] sm:$0xff] %v1158_v15  ;;  %v1167_v22 = vsel %vm1164_vm9, %v1165_v13, %v1166_v17  ;;  %v1175_v23 = vceil.f32 %v261_v10  ;;  %v1176_v24 = vfloor.f32 %v261_v10  ;;  %vm1179_vm12 = vcmp.lt.s32.totalorder %v262_v14, 0  ;;  %v274_v10 = vld [vmem:[%s1538_s22 + $0x3c0] sm:$0xff]  ;;  %v275_v17 = vld [vmem:[%s1538_s22 + $0x3c8] sm:$0xff] }
  0xcb   : > { %504 = vst [vmem:[%s1554_s16 + $0x340] sm:$0xff] %v1163_v18  ;;  %v1168_v26 = vcvt.f32.s32 %v1167_v22  ;;  %v1172_v27 = vsel %vm1169_vm10, %v1170_v19, %v1171_v20  ;;  %v1180_v28 = vceil.f32 %v262_v14  ;;  %v1181_v29 = vfloor.f32 %v262_v14 }
  0xcc   : > { %v1173_v31 = vcvt.f32.s32 %v1172_v27  ;;  %v1177_v32 = vsel %vm1174_vm11, %v1175_v23, %v1176_v24  ;;  %vm1184_vm13 = vcmp.lt.s32.totalorder %v263_v21, 0  ;;  %v1185_v33 = vceil.f32 %v263_v21 }
  0xcd   : > { %505 = vst [vmem:[%s1554_s16 + $0x348] sm:$0xff] %v1168_v26  ;;  %v1178_v35 = vcvt.f32.s32 %v1177_v32  ;;  %v1182_v36 = vsel %vm1179_vm12, %v1180_v28, %v1181_v29  ;;  %v1186_v37 = vfloor.f32 %v263_v21  ;;  %vm1189_vm14 = vcmp.lt.s32.totalorder %v264_v25, 0  ;;  %v276_v21 = vld [vmem:[%s1538_s22 + $0x3d0] sm:$0xff] }
  0xce   : > { %506 = vst [vmem:[%s1554_s16 + $0x350] sm:$0xff] %v1173_v31  ;;  %v1183_v38 = vcvt.f32.s32 %v1182_v36  ;;  %v1190_v39 = vceil.f32 %v264_v25  ;;  %v1191_v40 = vfloor.f32 %v264_v25  ;;  %vm1194_vm15 = vcmp.lt.s32.totalorder %v265_v30, 0 }
  0xcf   : > { %507 = vst [vmem:[%s1554_s16 + $0x358] sm:$0xff] %v1178_v35  ;;  %v1187_v42 = vsel %vm1184_vm13, %v1185_v33, %v1186_v37  ;;  %v1195_v43 = vceil.f32 %v265_v30  ;;  %v1196_v44 = vfloor.f32 %v265_v30  ;;  %vm1199_vm0 = vcmp.lt.s32.totalorder %v266_v34, 0 }
  0xd0   : > { %508 = vst [vmem:[%s1554_s16 + $0x360] sm:$0xff] %v1183_v38  ;;  %v1188_v46 = vcvt.f32.s32 %v1187_v42  ;;  %v1192_v47 = vsel %vm1189_vm14, %v1190_v39, %v1191_v40  ;;  %v1200_v48 = vceil.f32 %v266_v34  ;;  %v1201_v49 = vfloor.f32 %v266_v34 }
  0xd1   : > { %v1193_v51 = vcvt.f32.s32 %v1192_v47  ;;  %v1197_v52 = vsel %vm1194_vm15, %v1195_v43, %v1196_v44  ;;  %vm1204_vm1 = vcmp.lt.s32.totalorder %v267_v41, 0  ;;  %v1205_v53 = vceil.f32 %v267_v41 }
  0xd2   : > { %509 = vst [vmem:[%s1554_s16 + $0x368] sm:$0xff] %v1188_v46  ;;  %v1198_v55 = vcvt.f32.s32 %v1197_v52  ;;  %v1202_v56 = vsel %vm1199_vm0, %v1200_v48, %v1201_v49  ;;  %v1206_v57 = vfloor.f32 %v267_v41  ;;  %vm1209_vm2 = vcmp.lt.s32.totalorder %v268_v45, 0 }
  0xd3   : > { %510 = vst [vmem:[%s1554_s16 + $0x370] sm:$0xff] %v1193_v51  ;;  %v1203_v58 = vcvt.f32.s32 %v1202_v56  ;;  %v1210_v59 = vceil.f32 %v268_v45  ;;  %v1211_v60 = vfloor.f32 %v268_v45  ;;  %vm1214_vm3 = vcmp.lt.s32.totalorder %v269_v50, 0 }
  0xd4   : > { %511 = vst [vmem:[%s1554_s16 + $0x378] sm:$0xff] %v1198_v55  ;;  %v1207_v62 = vsel %vm1204_vm1, %v1205_v53, %v1206_v57  ;;  %v1215_v63 = vceil.f32 %v269_v50  ;;  %v1216_v0 = vfloor.f32 %v269_v50  ;;  %vm1219_vm4 = vcmp.lt.s32.totalorder %v270_v54, 0 }
  0xd5   : > { %512 = vst [vmem:[%s1554_s16 + $0x380] sm:$0xff] %v1203_v58  ;;  %v1208_v2 = vcvt.f32.s32 %v1207_v62  ;;  %v1212_v3 = vsel %vm1209_vm2, %v1210_v59, %v1211_v60  ;;  %v1220_v4 = vceil.f32 %v270_v54  ;;  %v1221_v5 = vfloor.f32 %v270_v54 }
  0xd6   : > { %v1213_v7 = vcvt.f32.s32 %v1212_v3  ;;  %v1217_v8 = vsel %vm1214_vm3, %v1215_v63, %v1216_v0  ;;  %vm1224_vm5 = vcmp.lt.s32.totalorder %v271_v61, 0  ;;  %v1225_v9 = vceil.f32 %v271_v61 }
  0xd7   : > { %513 = vst [vmem:[%s1554_s16 + $0x388] sm:$0xff] %v1208_v2  ;;  %v1218_v11 = vcvt.f32.s32 %v1217_v8  ;;  %v1222_v12 = vsel %vm1219_vm4, %v1220_v4, %v1221_v5  ;;  %v1226_v13 = vfloor.f32 %v271_v61  ;;  %vm1229_vm6 = vcmp.lt.s32.totalorder %v272_v1, 0 }
  0xd8   : > { %514 = vst [vmem:[%s1554_s16 + $0x390] sm:$0xff] %v1213_v7  ;;  %v1223_v14 = vcvt.f32.s32 %v1222_v12  ;;  %v1230_v15 = vceil.f32 %v272_v1  ;;  %v1231_v16 = vfloor.f32 %v272_v1  ;;  %vm1234_vm7 = vcmp.lt.s32.totalorder %v273_v6, 0 }
  0xd9   : > { %515 = vst [vmem:[%s1554_s16 + $0x398] sm:$0xff] %v1218_v11  ;;  %v1227_v18 = vsel %vm1224_vm5, %v1225_v9, %v1226_v13  ;;  %v1235_v19 = vceil.f32 %v273_v6  ;;  %v1236_v20 = vfloor.f32 %v273_v6  ;;  %vm1239_vm8 = vcmp.lt.s32.totalorder %v274_v10, 0 }
  0xda   : > { %516 = vst [vmem:[%s1554_s16 + $0x3a0] sm:$0xff] %v1223_v14  ;;  %v1228_v22 = vcvt.f32.s32 %v1227_v18  ;;  %v1232_v23 = vsel %vm1229_vm6, %v1230_v15, %v1231_v16  ;;  %v1240_v24 = vceil.f32 %v274_v10  ;;  %v1241_v25 = vfloor.f32 %v274_v10 }
  0xdb   : > { %v1233_v26 = vcvt.f32.s32 %v1232_v23  ;;  %v1237_v27 = vsel %vm1234_vm7, %v1235_v19, %v1236_v20  ;;  %vm1244_vm9 = vcmp.lt.s32.totalorder %v275_v17, 0  ;;  %v1245_v28 = vceil.f32 %v275_v17 }
  0xdc   : > { %517 = vst [vmem:[%s1554_s16 + $0x3a8] sm:$0xff] %v1228_v22  ;;  %v1238_v29 = vcvt.f32.s32 %v1237_v27  ;;  %v1242_v30 = vsel %vm1239_vm8, %v1240_v24, %v1241_v25  ;;  %v1246_v31 = vfloor.f32 %v275_v17  ;;  %vm1249_vm10 = vcmp.lt.s32.totalorder %v276_v21, 0 }
  0xdd   : > { %518 = vst [vmem:[%s1554_s16 + $0x3b0] sm:$0xff] %v1233_v26  ;;  %v1243_v32 = vcvt.f32.s32 %v1242_v30  ;;  %v1250_v33 = vceil.f32 %v276_v21  ;;  %v1251_v34 = vfloor.f32 %v276_v21 }
  0xde   : > { %519 = vst [vmem:[%s1554_s16 + $0x3b8] sm:$0xff] %v1238_v29  ;;  %v1247_v35 = vsel %vm1244_vm9, %v1245_v28, %v1246_v31  ;;  %530 = sbr.rel (!%p1475_p9) target bundleno = 258 (0x102), region = 32 }
  0xdf   : > { %520 = vst [vmem:[%s1554_s16 + $0x3c0] sm:$0xff] %v1243_v32  ;;  %v1248_v36 = vcvt.f32.s32 %v1247_v35  ;;  %v1252_v37 = vsel %vm1249_vm10, %v1250_v33, %v1251_v34 }
  0xe0   : > { %v1253_v38 = vcvt.f32.s32 %v1252_v37 }
  0xe1   : > { %521 = vst [vmem:[%s1554_s16 + $0x3c8] sm:$0xff] %v1248_v36 }
  0xe2   : > { %522 = vst [vmem:[%s1554_s16 + $0x3d0] sm:$0xff] %v1253_v38 }
  0xe3   : > { %s1872_s2 = smov (!%p533_p6, %s532_s2), 123 }
  0xe4   : > { %s628_s11 = sshll.u32 %s1872_s2, 3 }
  0xe5   : > { %s536_s20 = ssub.s32 984, %s628_s11 }
  0xe6   : > { %s537_s21 = sshll.u32 %s536_s20, 4 }
  0xe7   : > { %538 = vsyncadd %s524_s26, %s537_s21  ;;  %p1805_p13 = scmp.ne.s32.totalorder %s628_s11, 0  ;;  %s636_s23 = smul.u32 984, %s1452_s10 }
  0xe8   : > { %s543_s24 = sshll.u32 %s1554_s16, 4  ;;  %s632_s25 = sshll.u32 %s1872_s2, 7  ;;  %s1815_s24 = int_to_ptr.vmem [resolvable:$true] %s543_s24 }
  0xe9   : > { %s541_s3 = scalar_lea.hbm %s1859_s1, %s636_s23  ;;  %s1336_s5 = sshra.s32 %s1815_s24, 4  ;;  %s1337_s5 = int_to_ptr.vmem [resolvable:$true] %s1336_s5 }
  0xea   : > { %s545_s4 = sshll.u32 %s541_s3, 4  ;;  %s1338_s13 = sshrl.u32 %s632_s25, 4  ;;  %s1817_s4 = int_to_ptr.hbm [resolvable:$true] %s545_s4 }
  0xeb   : > { %s1343_s19 = scalar_lea.vmem %s1337_s5, %s1338_s13  ;;  %s1418_s10 = smov [#allocation5]  }
  0xec   : > { %p1344_p9 = scmp.ne.s32.totalorder %s1337_s5, %s1343_s19  ;;  %s1347_s28 = scalar_lea.vmem %s1418_s10, 1968 }
  0xed   : > { %p1349_p8 = scmp.lt.s32.totalorder %s1347_s28, %s1343_s19 }
  0xee   : > { %p1345_p5 = pnand %p1344_p9, %p1805_p13 }
  0xf0   : > { %p1346_p7 = pneg %p1345_p5 }
  0xf2   : > { %p1351_p11 = pnand %p1349_p8, %p1346_p7 }
  0xf4   : > { %1354 = shalt.err (!%p1351_p11)
}
  0xf5   : > { %s1355_s22 = sshra.s32 %s1817_s4, 4  ;;  %s1366_s20 = scalar_lea.hbm %s1859_s1, 7816  ;;  %s1356_s22 = int_to_ptr.hbm [resolvable:$true] %s1355_s22 }
  0xf6   : > { %s1362_s16 = scalar_lea.hbm %s1356_s22, %s1338_s13  ;;  %p1367_p2 = scmp.lt.s32.totalorder %s1356_s22, %s1859_s1 }
  0xf7   : > { %p1363_p12 = scmp.ne.s32.totalorder %s1356_s22, %s1362_s16  ;;  %p1368_p3 = scmp.lt.s32.totalorder %s1366_s20, %s1362_s16 }
  0xf9   : > { %p1364_p0 = pnand %p1363_p12, %p1805_p13  ;;  %p1369_p4 = por %p1368_p3, %p1367_p2 }
  0xfb   : > { %p1365_p1 = pneg %p1364_p0 }
  0xfd   : > { %p1370_p6 = pnand %p1369_p4, %p1365_p1 }
  0xff   : > { %1373 = shalt.err (!%p1370_p6)
}
 0x100   : > { %s1419_s27 = smov 128   ;;  %s1420_s29 = smov 8  }
 0x101   : > { %551 = dma.vmem_to_hbm [thread:$0]  (%p1805_p13), %s1815_s24, %s632_s25, %s1817_s4, %s524_s26, %s1419_s27, %s1419_s27, %s1420_s29  }
 0x102 PF: > { %p1260_p9 = scmp.ge.s32.totalorder %s1413_s9, 2  ;;  %s560_s3 = sand.u32 1, %s1401_s6  }
 0x103   : > { %s561_s5 = scalar_lea.sflag [#allocation4], %s560_s3 }
 0x104   : > { %p1257_p5 = pnand %p1260_p9, %p1479_p10 }
 0x106   : > { %p1258_p7 = pneg %p1257_p5 }
 0x108   : > { %1396 = dma.done.wait (%p1258_p7), %s561_s5, 15744  }
 0x109   : > { %1398 = vsyncadd (%p1258_p7), %s561_s5, 4294951552  ;;  %p14_p8 = scmp.ge.s32.totalorder %s1456_s12, 10   ;;  %s1865_s6 = smov %s1405_s7 }
 0x10a   : > { %s1866_s7 = smov %s1409_s8  ;;  %s1867_s8 = smov %s1468_s15 }
 0x10b   : > { %s1868_s9 = smov %s1456_s12  ;;  %16 = sbr.rel (!%p14_p8) target bundleno = 5 (0x5), region = 69 }
 0x110   :  { %567 = vsyncpa [#allocation3], 1 }
 0x111   :  { %569 = vsyncpa [#allocation3 + $0x1], 1 }
 0x112   :  { %570 = vsyncpa [#allocation4], 1 }
 0x113   :  { %572 = vsyncpa [#allocation4 + $0x1], 1 }

</bundles_post_ra>
